<compile_context>
chip_gen: v6e
topology: v6e:2x2x1
jax: 0.10.0
libtpu: 0.0.40
codegen_flags: <defaults>
</compile_context>

<pallas_src>
import functools
from math import sqrt

import jax
import jax.numpy as jnp
from jax.experimental import pallas as pl
from jax.experimental.pallas import tpu as pltpu

EMB_LN_EPS = 1e-12   # Embeddings: nn.LayerNorm(embed_dim, 1e-12)
ENC_LN_EPS = 1e-5    # Encoder layers: nn.LayerNorm(embed_dim) default eps


def _layernorm(x, gamma, beta, eps):
    mean = jnp.mean(x, axis=-1, keepdims=True)
    xc = x - mean
    var = jnp.mean(xc * xc, axis=-1, keepdims=True)
    return xc * jax.lax.rsqrt(var + eps) * gamma + beta


def _erf_approx(x):
    # Abramowitz & Stegun 7.1.26 rational approximation, |err| < 1.5e-7.
    # Used because lax.erf has no Mosaic lowering; keeps nn.GELU() (exact erf)
    # semantics to within ~1e-7.
    a1, a2, a3, a4, a5 = (0.254829592, -0.284496736, 1.421413741,
                          -1.453152027, 1.061405429)
    p = 0.3275911
    s = jnp.where(x >= 0.0, 1.0, -1.0)
    ax = jnp.abs(x)
    t = 1.0 / (1.0 + p * ax)
    poly = ((((a5 * t + a4) * t + a3) * t + a2) * t + a1) * t
    return s * (1.0 - poly * jnp.exp(-ax * ax))


def _gelu_exact(x):
    return 0.5 * x * (1.0 + _erf_approx(x * 0.7071067811865476))


# ---------------------------------------------------------------------------
# Embeddings kernel
# ---------------------------------------------------------------------------
def embeddings_kernel(ids_ref, pos_ids_ref, tok_ref, pos_ref,
                      gamma_ref, beta_ref, out_ref):
    """One grid step handles a tile of flattened (batch*seq) rows.

    ids_ref     : VMEM [T, 1] int32 token ids
    pos_ids_ref : VMEM [T, 1] int32 position ids (row % S)
    tok_ref     : VMEM [V, D] token embedding table
    pos_ref     : VMEM [S, D] positional embedding table (pre-sliced to S rows)
    gamma/beta  : VMEM [1, D] LayerNorm params
    out_ref     : VMEM [T, D]
    """
    ids = ids_ref[...]            # (T, 1)
    pids = pos_ids_ref[...]       # (T, 1)
    T = ids.shape[0]
    V = tok_ref.shape[0]
    S = pos_ref.shape[0]

    # One-hot MXU gathers: (T, V) @ (V, D) and (T, S) @ (S, D).
    tok_oh = (ids == jax.lax.broadcasted_iota(jnp.int32, (T, V), 1)
              ).astype(jnp.float32)
    pos_oh = (pids == jax.lax.broadcasted_iota(jnp.int32, (T, S), 1)
              ).astype(jnp.float32)
    x = (jnp.dot(tok_oh, tok_ref[...], preferred_element_type=jnp.float32)
         + jnp.dot(pos_oh, pos_ref[...], preferred_element_type=jnp.float32))

    y = _layernorm(x, gamma_ref[...], beta_ref[...], EMB_LN_EPS)
    # nn.Dropout() -> identity in eval mode.
    out_ref[...] = y.astype(out_ref.dtype)


def embeddings_forward(input_ids, tok_table, pos_table, gamma, beta):
    B, S = input_ids.shape
    V, D = tok_table.shape
    N = B * S

    ids_flat = input_ids.reshape(N, 1).astype(jnp.int32)
    pos_flat = jnp.tile(jnp.arange(S, dtype=jnp.int32), B).reshape(N, 1)
    pos_s = pos_table[:S]                       # only the rows actually used

    row_tile = N if N <= 512 else 512           # big row tiles per grid step
    assert N % row_tile == 0
    grid = (N // row_tile,)

    out = pl.pallas_call(
        embeddings_kernel,
        out_shape=jax.ShapeDtypeStruct((N, D), jnp.float32),
        grid=grid,
        in_specs=[
            pl.BlockSpec((row_tile, 1), lambda r: (r, 0)),   # token ids
            pl.BlockSpec((row_tile, 1), lambda r: (r, 0)),   # position ids
            pl.BlockSpec((V, D), lambda r: (0, 0)),          # token table
            pl.BlockSpec((S, D), lambda r: (0, 0)),          # pos table (S rows)
            pl.BlockSpec((1, D), lambda r: (0, 0)),          # LN gamma
            pl.BlockSpec((1, D), lambda r: (0, 0)),          # LN beta
        ],
        out_specs=pl.BlockSpec((row_tile, D), lambda r: (r, 0)),
        compiler_params=pltpu.CompilerParams(
            dimension_semantics=("parallel",)),
    )(ids_flat, pos_flat, tok_table, pos_s,
      gamma.reshape(1, D), beta.reshape(1, D))
    return out.reshape(B, S, D)


# ---------------------------------------------------------------------------
# TransformerEncoderLayer kernel (one batch row per grid step)
# ---------------------------------------------------------------------------
def encoder_layer_kernel(x_ref, wq_ref, bq_ref, wk_ref, bk_ref,
                         wo_ref, bo_ref,
                         ln1g_ref, ln1b_ref, ln2g_ref, ln2b_ref,
                         w1_ref, b1_ref, w2_ref, b2_ref,
                         out_ref, *, num_heads):
    x = x_ref[...].astype(jnp.float32)            # (S, D)
    S, D = x.shape
    hd = D // num_heads

    # ---- LN1 + multi-head attention -------------------------------------
    xn = _layernorm(x, ln1g_ref[...], ln1b_ref[...], ENC_LN_EPS)

    q = jnp.dot(xn, wq_ref[...], preferred_element_type=jnp.float32) + bq_ref[...]
    k = jnp.dot(xn, wk_ref[...], preferred_element_type=jnp.float32) + bk_ref[...]
    kt = k.T                                      # (D, S), one aligned transpose
    # NOTE: the reference module uses v = q_net(inputs), i.e. v == q (preserved).
    scale = 1.0 / sqrt(S)                         # torch: / sqrt(q.shape[1]) == seq_len
    # TODO(synk): optional attention_mask (masked_fill -1e9) not implemented.

    head_outs = []
    for h in range(num_heads):                    # small static loop -> unrolled
        qh = q[:, h * hd:(h + 1) * hd]            # (S, hd)
        kth = kt[h * hd:(h + 1) * hd, :]          # (hd, S)
        scores = jnp.dot(qh, kth, preferred_element_type=jnp.float32) * scale
        scores = scores - jnp.max(scores, axis=-1, keepdims=True)
        e = jnp.exp(scores)
        p = e / jnp.sum(e, axis=-1, keepdims=True)
        head_outs.append(jnp.dot(p, qh, preferred_element_type=jnp.float32))
    attn = jnp.concatenate(head_outs, axis=-1)    # (S, D)
    attn = jnp.dot(attn, wo_ref[...], preferred_element_type=jnp.float32) + bo_ref[...]

    x1 = xn + attn                                # residual adds LN1(x), as in module

    # ---- LN2 + FeedForward ----------------------------------------------
    xn2 = _layernorm(x1, ln2g_ref[...], ln2b_ref[...], ENC_LN_EPS)
    h1 = jnp.dot(xn2, w1_ref[...], preferred_element_type=jnp.float32) + b1_ref[...]
    h1 = _gelu_exact(h1)
    ff = jnp.dot(h1, w2_ref[...], preferred_element_type=jnp.float32) + b2_ref[...]
    # nn.Dropout(0.1) -> identity in eval mode.
    out_ref[...] = (x1 + ff).astype(out_ref.dtype)


def encoder_layer_forward(x, p, *, num_heads):
    B, S, D = x.shape
    I = p["w1"].shape[1]

    def rep(shape):                               # weight block: full, re-used
        zeros = (0,) * len(shape)
        return pl.BlockSpec(shape, lambda b, zeros=zeros: zeros)

    kernel = functools.partial(encoder_layer_kernel, num_heads=num_heads)
    return pl.pallas_call(
        kernel,
        out_shape=jax.ShapeDtypeStruct((B, S, D), jnp.float32),
        grid=(B,),
        in_specs=[
            pl.BlockSpec((None, S, D), lambda b: (b, 0, 0)),  # x (batch squeezed)
            rep((D, D)), rep((1, D)),      # Wq, bq
            rep((D, D)), rep((1, D)),      # Wk, bk
            rep((D, D)), rep((1, D)),      # Wo, bo
            rep((1, D)), rep((1, D)),      # ln1 gamma / beta
            rep((1, D)), rep((1, D)),      # ln2 gamma / beta
            rep((D, I)), rep((1, I)),      # W1, b1
            rep((I, D)), rep((1, D)),      # W2, b2
        ],
        out_specs=pl.BlockSpec((None, S, D), lambda b: (b, 0, 0)),
        compiler_params=pltpu.CompilerParams(
            dimension_semantics=("parallel",)),
    )(x,
      p["wq"], p["bq"].reshape(1, D),
      p["wk"], p["bk"].reshape(1, D),
      p["wo"], p["bo"].reshape(1, D),
      p["ln1_g"].reshape(1, D), p["ln1_b"].reshape(1, D),
      p["ln2_g"].reshape(1, D), p["ln2_b"].reshape(1, D),
      p["w1"], p["b1"].reshape(1, I),
      p["w2"], p["b2"].reshape(1, D))


def transformer_encoder_forward(input_ids, params, *, num_heads):
    x = embeddings_forward(input_ids, params["tok_table"], params["pos_table"],
                           params["emb_ln_g"], params["emb_ln_b"])
    for lp in params["layers"]:
        x = encoder_layer_forward(x, lp, num_heads=num_heads)
    return x


# ---------------------------------------------------------------------------
# Pure-JAX reference (mirrors the PyTorch forward exactly, incl. v=q and 1/sqrt(S))
# ---------------------------------------------------------------------------
def transformer_encoder_reference(input_ids, params, *, num_heads):
    B, S = input_ids.shape
    tok = params["tok_table"][input_ids]                       # (B, S, D)
    pos = params["pos_table"][:S]                              # (S, D)
    x = _layernorm(tok + pos[None], params["emb_ln_g"],
                   params["emb_ln_b"], EMB_LN_EPS)
    for p in params["layers"]:
        D = x.shape[-1]
        hd = D // num_heads
        xn = _layernorm(x, p["ln1_g"], p["ln1_b"], ENC_LN_EPS)
        q = xn @ p["wq"] + p["bq"]
        k = xn @ p["wk"] + p["bk"]
        scale = 1.0 / sqrt(S)
        outs = []
        for h in range(num_heads):
            qh = q[..., h * hd:(h + 1) * hd]
            kh = k[..., h * hd:(h + 1) * hd]
            s = jnp.einsum("bqd,bkd->bqk", qh, kh) * scale
            a = jax.nn.softmax(s, axis=-1)
            outs.append(jnp.einsum("bqk,bkd->bqd", a, qh))      # v == q
        attn = jnp.concatenate(outs, axis=-1) @ p["wo"] + p["bo"]
        x = xn + attn
        xn2 = _layernorm(x, p["ln2_g"], p["ln2_b"], ENC_LN_EPS)
        h1 = jax.nn.gelu(xn2 @ p["w1"] + p["b1"], approximate=False)
        x = x + (h1 @ p["w2"] + p["b2"])
    return x


if __name__ == "__main__":
    jax.config.update("jax_default_matmul_precision", "highest")

    # Small config: vocab=64, max_seq=16, embed=128, heads=4, intermediate=256, blocks=2
    VOCAB, MAX_SEQ = 64, 16
    EMBED, HEADS, INTER, LAYERS = 128, 4, 256, 2
    B, S = 2, 8

    key = jax.random.PRNGKey(0)
    keys = jax.random.split(key, 4 + LAYERS)

    input_ids = jax.random.randint(keys[0], (B, S), 0, VOCAB, dtype=jnp.int32)

    params = {
        "tok_table": jax.random.normal(keys[1], (VOCAB, EMBED), jnp.float32) * 0.02,
        "pos_table": jax.random.normal(keys[2], (MAX_SEQ, EMBED), jnp.float32) * 0.02,
        "emb_ln_g": jnp.ones((EMBED,), jnp.float32),
        "emb_ln_b": jnp.zeros((EMBED,), jnp.float32),
        "layers": [],
    }
    for li in range(LAYERS):
        lk = jax.random.split(keys[4 + li], 8)
        w = 0.05
        params["layers"].append({
            "wq": jax.random.normal(lk[0], (EMBED, EMBED), jnp.float32) * w,
            "bq": jax.random.normal(lk[1], (EMBED,), jnp.float32) * w,
            "wk": jax.random.normal(lk[2], (EMBED, EMBED), jnp.float32) * w,
            "bk": jax.random.normal(lk[3], (EMBED,), jnp.float32) * w,
            "wo": jax.random.normal(lk[4], (EMBED, EMBED), jnp.float32) * w,
            "bo": jnp.zeros((EMBED,), jnp.float32),
            "ln1_g": jnp.ones((EMBED,), jnp.float32),
            "ln1_b": jnp.zeros((EMBED,), jnp.float32),
            "ln2_g": jnp.ones((EMBED,), jnp.float32),
            "ln2_b": jnp.zeros((EMBED,), jnp.float32),
            "w1": jax.random.normal(lk[5], (EMBED, INTER), jnp.float32) * w,
            "b1": jnp.zeros((INTER,), jnp.float32),
            "w2": jax.random.normal(lk[6], (INTER, EMBED), jnp.float32) * w,
            "b2": jnp.zeros((EMBED,), jnp.float32),
        })

    out = transformer_encoder_forward(input_ids, params, num_heads=HEADS)
    out = jax.block_until_ready(out)

    ref = transformer_encoder_reference(input_ids, params, num_heads=HEADS)
    ref = jax.block_until_ready(ref)

    assert out.shape == (B, S, EMBED)
    err = float(jnp.max(jnp.abs(out - ref)))
    assert err < 5e-3, f"max abs err {err}"

    print("KERNEL_OK")
</pallas_src>

<mosaic_0001>
module attributes {stable_mosaic.version = 11 : i64} {
  func.func @embeddings_kernel(%arg0: i32, %arg1: memref<16x1xi32, #tpu.memory_space<vmem>>, %arg2: memref<16x1xi32, #tpu.memory_space<vmem>>, %arg3: memref<64x128xf32, #tpu.memory_space<vmem>>, %arg4: memref<8x128xf32, #tpu.memory_space<vmem>>, %arg5: memref<1x128xf32, #tpu.memory_space<vmem>>, %arg6: memref<1x128xf32, #tpu.memory_space<vmem>>, %arg7: memref<16x128xf32, #tpu.memory_space<vmem>>) attributes {dimension_semantics = [#tpu.dimension_semantics<parallel>], iteration_bounds = array<i64: 1>, scalar_prefetch = 0 : i64, scratch_operands = 0 : i64, tpu.core_type = #tpu.core_type<tc>, window_params = [{transform_indices = @transform_0, window_bounds = array<i64: 16, 1>}, {transform_indices = @transform_1, window_bounds = array<i64: 16, 1>}, {pipeline_mode = #tpu.pipeline_mode<synchronous>, transform_indices = @transform_2, window_bounds = array<i64: 64, 128>}, {pipeline_mode = #tpu.pipeline_mode<synchronous>, transform_indices = @transform_3, window_bounds = array<i64: 8, 128>}, {pipeline_mode = #tpu.pipeline_mode<synchronous>, transform_indices = @transform_4, window_bounds = array<i64: 1, 128>}, {pipeline_mode = #tpu.pipeline_mode<synchronous>, transform_indices = @transform_5, window_bounds = array<i64: 1, 128>}, {transform_indices = @transform_6, window_bounds = array<i64: 16, 128>}]} {
    %c0 = arith.constant 0 : index
    %c0_0 = arith.constant 0 : index
    %0 = vector.load %arg1[%c0, %c0_0] : memref<16x1xi32, #tpu.memory_space<vmem>>, vector<16x1xi32>
    %c0_1 = arith.constant 0 : index
    %c0_2 = arith.constant 0 : index
    %1 = vector.load %arg2[%c0_1, %c0_2] : memref<16x1xi32, #tpu.memory_space<vmem>>, vector<16x1xi32>
    %2 = tpu.iota {dimensions = array<i32: 1>} : vector<16x64xi32>
    %3 = vector.broadcast %0 : vector<16x1xi32> to vector<16x64xi32>
    %4 = arith.cmpi eq, %3, %2 : vector<16x64xi32>
    %5 = arith.extui %4 : vector<16x64xi1> to vector<16x64xi32>
    %6 = arith.sitofp %5 : vector<16x64xi32> to vector<16x64xf32>
    %7 = tpu.iota {dimensions = array<i32: 1>} : vector<16x8xi32>
    %8 = vector.broadcast %1 : vector<16x1xi32> to vector<16x8xi32>
    %9 = arith.cmpi eq, %8, %7 : vector<16x8xi32>
    %10 = arith.extui %9 : vector<16x8xi1> to vector<16x8xi32>
    %11 = arith.sitofp %10 : vector<16x8xi32> to vector<16x8xf32>
    %c0_3 = arith.constant 0 : index
    %c0_4 = arith.constant 0 : index
    %12 = vector.load %arg3[%c0_3, %c0_4] : memref<64x128xf32, #tpu.memory_space<vmem>>, vector<64x128xf32>
    %cst = arith.constant dense<0.000000e+00> : vector<16x128xf32>
    %13 = tpu.matmul %6, %12, %cst {dimension_numbers = #tpu.dot_dimension_numbers<[1], [0], [0], [1], [0, 0, 1, 1], [], []>, precision = #tpu.contract_precision<fp32>} : vector<16x64xf32>, vector<64x128xf32>, vector<16x128xf32> -> vector<16x128xf32>
    %c0_5 = arith.constant 0 : index
    %c0_6 = arith.constant 0 : index
    %14 = vector.load %arg4[%c0_5, %c0_6] : memref<8x128xf32, #tpu.memory_space<vmem>>, vector<8x128xf32>
    %cst_7 = arith.constant dense<0.000000e+00> : vector<16x128xf32>
    %15 = tpu.matmul %11, %14, %cst_7 {dimension_numbers = #tpu.dot_dimension_numbers<[1], [0], [0], [1], [0, 0, 1, 1], [], []>, precision = #tpu.contract_precision<fp32>} : vector<16x8xf32>, vector<8x128xf32>, vector<16x128xf32> -> vector<16x128xf32>
    %16 = arith.addf %13, %15 : vector<16x128xf32>
    %c0_8 = arith.constant 0 : index
    %c0_9 = arith.constant 0 : index
    %17 = vector.load %arg5[%c0_8, %c0_9] : memref<1x128xf32, #tpu.memory_space<vmem>>, vector<1x128xf32>
    %c0_10 = arith.constant 0 : index
    %c0_11 = arith.constant 0 : index
    %18 = vector.load %arg6[%c0_10, %c0_11] : memref<1x128xf32, #tpu.memory_space<vmem>>, vector<1x128xf32>
    %cst_12 = arith.constant dense<0.000000e+00> : vector<16xf32>
    %19 = vector.multi_reduction <add>, %16, %cst_12 [1] : vector<16x128xf32> to vector<16xf32>
    %20 = vector.shape_cast %19 : vector<16xf32> to vector<16x1xf32>
    %cst_13 = arith.constant 1.280000e+02 : f32
    %21 = vector.broadcast %cst_13 : f32 to vector<16x1xf32>
    %22 = arith.divf %20, %21 : vector<16x1xf32>
    %23 = vector.broadcast %22 : vector<16x1xf32> to vector<16x128xf32>
    %24 = arith.subf %16, %23 : vector<16x128xf32>
    %25 = arith.mulf %24, %24 : vector<16x128xf32>
    %cst_14 = arith.constant dense<0.000000e+00> : vector<16xf32>
    %26 = vector.multi_reduction <add>, %25, %cst_14 [1] : vector<16x128xf32> to vector<16xf32>
    %27 = vector.shape_cast %26 : vector<16xf32> to vector<16x1xf32>
    %cst_15 = arith.constant 1.280000e+02 : f32
    %28 = vector.broadcast %cst_15 : f32 to vector<16x1xf32>
    %29 = arith.divf %27, %28 : vector<16x1xf32>
    %cst_16 = arith.constant 9.99999996E-13 : f32
    %30 = vector.broadcast %cst_16 : f32 to vector<16x1xf32>
    %31 = arith.addf %29, %30 : vector<16x1xf32>
    %32 = math.rsqrt %31 : vector<16x1xf32>
    %33 = vector.broadcast %32 : vector<16x1xf32> to vector<16x128xf32>
    %34 = arith.mulf %24, %33 : vector<16x128xf32>
    %35 = vector.broadcast %17 : vector<1x128xf32> to vector<16x128xf32>
    %36 = arith.mulf %34, %35 : vector<16x128xf32>
    %37 = vector.broadcast %18 : vector<1x128xf32> to vector<16x128xf32>
    %38 = arith.addf %36, %37 : vector<16x128xf32>
    %c0_17 = arith.constant 0 : index
    %c0_18 = arith.constant 0 : index
    %39 = vector.load %arg7[%c0_17, %c0_18] : memref<16x128xf32, #tpu.memory_space<vmem>>, vector<16x128xf32>
    tpu.vector_store %arg7[%c0_17, %c0_18], %38 {strides = array<i32>} : memref<16x128xf32, #tpu.memory_space<vmem>>, vector<16x128xf32>,
    return
  }
  func.func @transform_0(%arg0: i32) -> (i32, i32) {
    %c0_i32 = arith.constant 0 : i32
    %c0_i32_0 = arith.constant 0 : i32
    return %arg0, %c0_i32 : i32, i32
  }
  func.func @transform_1(%arg0: i32) -> (i32, i32) {
    %c0_i32 = arith.constant 0 : i32
    %c0_i32_0 = arith.constant 0 : i32
    return %arg0, %c0_i32 : i32, i32
  }
  func.func @transform_2(%arg0: i32) -> (i32, i32) {
    %c0_i32 = arith.constant 0 : i32
    %c0_i32_0 = arith.constant 0 : i32
    %c0_i32_1 = arith.constant 0 : i32
    return %c0_i32, %c0_i32_0 : i32, i32
  }
  func.func @transform_3(%arg0: i32) -> (i32, i32) {
    %c0_i32 = arith.constant 0 : i32
    %c0_i32_0 = arith.constant 0 : i32
    %c0_i32_1 = arith.constant 0 : i32
    return %c0_i32, %c0_i32_0 : i32, i32
  }
  func.func @transform_4(%arg0: i32) -> (i32, i32) {
    %c0_i32 = arith.constant 0 : i32
    %c0_i32_0 = arith.constant 0 : i32
    %c0_i32_1 = arith.constant 0 : i32
    return %c0_i32, %c0_i32_0 : i32, i32
  }
  func.func @transform_5(%arg0: i32) -> (i32, i32) {
    %c0_i32 = arith.constant 0 : i32
    %c0_i32_0 = arith.constant 0 : i32
    %c0_i32_1 = arith.constant 0 : i32
    return %c0_i32, %c0_i32_0 : i32, i32
  }
  func.func @transform_6(%arg0: i32) -> (i32, i32) {
    %c0_i32 = arith.constant 0 : i32
    %c0_i32_0 = arith.constant 0 : i32
    return %arg0, %c0_i32 : i32, i32
  }
}

</mosaic_0001>

<bundles_post_ra>
// kernel: tpu_custom_call.1
= control target key start
LH: loop header
LB: loop body
LE: loop exit
PB: predicated region body
PF: predicated region fallthrough
CT: control target
= control target key end

     0   :  { %11 = vsyncpa [#allocation3], 0  ;;  %s1825_s0 = inlined_call_operand.vmem [shape: s32[16,1], index: 0, kind: input, shape index: {}]   ;;  %s1826_s1 = inlined_call_operand.vmem [shape: s32[16,1], index: 1, kind: input, shape index: {}]   ;;  %s1827_s2 = inlined_call_operand.hbm [shape: f32[64,128], index: 2, kind: input, shape index: {}]   ;;  %s1828_s3 = inlined_call_operand.vmem [shape: f32[8,128], index: 3, kind: input, shape index: {}]   ;;  %s1829_s4 = inlined_call_operand.vmem [shape: f32[1,128], index: 4, kind: input, shape index: {}]   ;;  %s1830_s5 = inlined_call_operand.vmem [shape: f32[1,128], index: 5, kind: input, shape index: {}]   ;;  %s1831_s6 = inlined_call_operand.hbm [shape: f32[16,128], index: 6, kind: output, shape index: {}]  }
   0x1   :  { %12 = vsyncpa [#allocation4], 0  ;;  %s1516_s21 = smov [#allocation2]  }
   0x2   :  { %s22_s22 = sshll.u32 %s1516_s21, 4  ;;  %s23_s22 = int_to_ptr.vmem [resolvable:$true] %s22_s22 }
   0x3   :  { %s1480_s23 = scalar_lea.vmem %s23_s22, 1024  ;;  %p1485_p1 = scmp.lt.s32.totalorder %s23_s22, %s23_s22 }
   0x4   :  { %p1481_p0 = scmp.ne.s32.totalorder %s23_s22, %s1480_s23  ;;  %p1486_p2 = scmp.lt.s32.totalorder %s1480_s23, %s1480_s23 }
   0x6   :  { %p1487_p3 = por %p1486_p2, %p1485_p1 }
   0x8   :  { %p1488_p4 = pnand %p1487_p3, %p1481_p0 }
   0xa   :  { %1491 = shalt.err (!%p1488_p4)
}
   0xb   :  { %s1517_s24 = smov 128   ;;  %s1518_s25 = smov 8  }
   0xc   :  { %28 = dma.hbm_to_vmem [thread:$0]  %s1827_s2, 1024, %s23_s22, [#allocation3], %s1517_s24, %s1517_s24, %s1518_s25  }
   0xd   :  { %1512 = dma.done.wait [#allocation3], 1024  }
   0xe   :  { %1513 = vsyncadd [#allocation3], 4294966272  ;;  %v1519_v0 = vmov 0   ;;  %v40_v1 = vld [vmem:[%s1826_s1] sm:$0xff]  ;;  %v41_v4 = vld [vmem:[%s1826_s1 + $0x8] sm:$0xff]  ;;  %v42_v12 = vlaneseq  ;;  %vm77_vm0 = vcmask 64512  }
   0xf   :  { %1466 = vset.pattern.permute.xlu0 %v1519_v0  ;;  %1467 = vset.pattern.permute.xlu1 %v1519_v0  ;;  %v38_v2 = vld [vmem:[%s1825_s0] sm:$0xff]  ;;  %v39_v5 = vld [vmem:[%s1825_s0 + $0x8] sm:$0xff]  ;;  %v75_v11 = vld [vmem:[#allocation2 + $0x38] sm:$0xff]  ;;  %v1520_v25 = vmov 0.0   ;;  %vm573_vm4 = vcmask 523264   ;;  %s1521_s14 = smov [#allocation5]  }
  0x10   :  { %57 = vperm.xlu0 %1466, %v40_v1   ;;  %45 = vperm.xlu1 %1467, %v38_v2   ;;  %v76_v3 = vld [vmem:[%s1828_s3] sm:$0xff]  ;;  %v1592_v13 = vand.u32 4294901760, %v75_v11  ;;  %v74_v14 = vld [vmem:[#allocation2 + $0x30] sm:$0xff]  ;;  %v73_v15 = vld [vmem:[#allocation2 + $0x28] sm:$0xff]  ;;  %v1594_v16 = vand.u32 127, %v42_v12  ;;  %s1208_s15 = sshll.u32 %s1521_s14, 4  ;;  %s1209_s15 = int_to_ptr.vmem [resolvable:$true] %s1208_s15 }
  0x11   :  { %v1578_v6 = vand.u32 4294901760, %v76_v3  ;;  %v1599_v18 = vand.u32 4294901760, %v74_v14  ;;  %v1601_v19 = vand.u32 4294901760, %v73_v15  ;;  %v72_v20 = vld [vmem:[#allocation2 + $0x20] sm:$0xff]  ;;  %v71_v24 = vld [vmem:[#allocation2 + $0x18] sm:$0xff]  ;;  %v70_v30 = vld [vmem:[#allocation2 + $0x10] sm:$0xff]  ;;  %p1497_p6 = scmp.lt.s32.totalorder %s1209_s15, %s1209_s15 }
  0x12   :  { %v1597_v17 = vsub.f32 %v75_v11, %v1592_v13  ;;  %v1613_v27 = vand.u32 4294901760, %v72_v20  ;;  %v1622_v33 = vand.u32 4294901760, %v71_v24  ;;  %v69_v36 = vld [vmem:[#allocation2 + $0x8] sm:$0xff]  ;;  %v1636_v40 = vand.u32 4294901760, %v70_v30  ;;  %v68_v47 = vld [vmem:[#allocation2] sm:$0xff]  ;;  %s1492_s16 = scalar_lea.vmem %s1209_s15, 256 }
  0x13   :  { %v1581_v7 = vsub.f32 %v76_v3, %v1578_v6  ;;  %1316 = vmatprep.subr.mxu0 %v1578_v6  ;;  %v1608_v23 = vsub.f32 %v74_v14, %v1599_v18  ;;  %v1620_v29 = vsub.f32 %v73_v15, %v1601_v19  ;;  %v1649_v46 = vand.u32 4294901760, %v69_v36  ;;  %p1493_p5 = scmp.ne.s32.totalorder %s1209_s15, %s1492_s16  ;;  %p1498_p7 = scmp.lt.s32.totalorder %s1492_s16, %s1492_s16 }
  0x14   :  { %60 = vperm.xlu0 %1466, %v41_v4   ;;  %48 = vperm.xlu1 %1467, %v39_v5   ;;  %v1605_v22 = vand.u32 4294901760, %v1597_v17  ;;  %v1634_v39 = vsub.f32 %v72_v20, %v1613_v27  ;;  %v1647_v45 = vsub.f32 %v71_v24, %v1622_v33  ;;  %v1658_v54 = vsub.f32 %v70_v30, %v1636_v40 }
  0x15   :  { %v1585_v8 = vand.u32 4294901760, %v1581_v7  ;;  %1317 = vmatpush3.msra.mxu0 %v1578_v6  ;;  %v1628_v35 = vand.u32 4294901760, %v1608_v23  ;;  %v1643_v42 = vand.u32 4294901760, %v1620_v29  ;;  %v1662_v56 = vand.u32 4294901760, %v68_v47  ;;  %p1499_p8 = por %p1498_p7, %p1497_p6 }
  0x16   :  { %1326 = vmatprep.subr.mxu0 %v1581_v7  ;;  %v693_v34 = vsub.f32 %v1597_v17, %v1605_v22  ;;  %v1655_v53 = vand.u32 4294901760, %v1634_v39  ;;  %v1666_v58 = vand.u32 4294901760, %v1647_v45  ;;  %v1669_v59 = vsub.f32 %v69_v36, %v1649_v46 }
  0x17   :  { %v204_v9 = vsub.f32 %v1581_v7, %v1585_v8  ;;  %v700_v49 = vsub.f32 %v1608_v23, %v1628_v35  ;;  %v707_v55 = vsub.f32 %v1620_v29, %v1643_v42  ;;  %v1677_v63 = vand.u32 4294901760, %v1658_v54  ;;  %p1500_p9 = pnand %p1499_p8, %p1493_p5 }
  0x18   :  { %v694_v48 = vand.u32 4294901760, %v693_v34  ;;  %v714_v62 = vsub.f32 %v1634_v39, %v1655_v53  ;;  %v1683_v1 = vsub.f32 %v68_v47, %v1662_v56  ;;  %v721_v4 = vsub.f32 %v1647_v45, %v1666_v58 }
  0x19   :  { %v205_v10 = vand.u32 4294901760, %v204_v9  ;;  %v701_v61 = vand.u32 4294901760, %v700_v49  ;;  %v708_v2 = vand.u32 4294901760, %v707_v55  ;;  %v1690_v5 = vand.u32 4294901760, %v1669_v59 }
  0x1a   :  { %v715_v9 = vand.u32 4294901760, %v714_v62  ;;  %v1700_v11 = vand.u32 4294901760, %v1683_v1 }
  0x1b   :  { %1321 = vmatprep.subr.mxu1 %v205_v10  ;;  %v735_v12 = vsub.f32 %v1669_v59, %v1690_v5 }
  0x1c   :  { %1322 = vmatpush3.msra.mxu1 %v205_v10  ;;  %v728_v10 = vsub.f32 %v1658_v54, %v1677_v63  ;;  %v742_v20 = vsub.f32 %v1683_v1, %v1700_v11 }
  0x1d   :  { %1331 = vmatprep.subr.mxu1 %v1578_v6 }
  0x8b   :  { %v58_v21 = vpop.permute.xlu0 %57  ;;  %v46_v52 = vpop.permute.xlu1 %45 }
  0x8c   :  { %vm62_vm1 = vcmp.eq.s32.totalorder %v58_v21, %v1594_v16  ;;  %vm50_vm3 = vcmp.eq.s32.totalorder %v46_v52, %v1594_v16 }
  0x8d   :  { %v1611_v26 = vsel %vm62_vm1, 1.0, %v1520_v25  ;;  %v1680_v0 = vsel %vm50_vm3, 1.0, %v1520_v25 }
  0x8e   :  { %v79_v28 = vsel %vm77_vm0, %v1611_v26, 0  ;;  %1323 = vmatprep.mubr.msk.f32.mxu1 %vm77_vm0, %v1611_v26 }
  0x8f   :  { %v151_v31 = vsub.f32 %v79_v28, %v79_v28  ;;  %v61_v32 = vpop.permute.xlu0 %60  ;;  %v49_v3 = vpop.permute.xlu1 %48 }
  0x90   :  { %vm63_vm2 = vcmp.eq.s32.totalorder %v61_v32, %v1594_v16  ;;  %vm51_vm5 = vcmp.eq.s32.totalorder %v49_v3, %v1594_v16  ;;  %v729_v16 = vand.u32 4294901760, %v728_v10 }
  0x91   :  { %v1631_v37 = vsel %vm63_vm2, 1.0, %v1520_v25  ;;  %v152_v38 = vand.u32 4294901760, %v151_v31  ;;  %v1708_v15 = vsel %vm51_vm5, 1.0, %v1520_v25  ;;  %v743_v25 = vand.u32 4294901760, %v742_v20 }
  0x92   :  { %v82_v41 = vsel %vm77_vm0, %v1631_v37, 0  ;;  %1324 = vmatmul.mubr.msk.f32.vlgmr.msra.gmra.mxu1 %vm77_vm0, %v1631_v37  ;;  %v578_v21 = vsel %vm573_vm4, %v1708_v15, 0 }
  0x93   :  { %v161_v43 = vsub.f32 %v82_v41, %v82_v41  ;;  %1333 = vmatprep.mubr.f32.mxu1 %v152_v38  ;;  %1332 = vmatpush3.msra.mxu1 %v1578_v6  ;;  %v153_v44 = vsub.f32 %v151_v31, %v152_v38 }
  0x94   :  { %1341 = vmatprep.subr.mxu1 %v1578_v6 }
  0x95   :  { %v154_v50 = vand.u32 4294901760, %v153_v44  ;;  %v162_v51 = vand.u32 4294901760, %v161_v43 }
  0x97   :  { %1318 = vmatprep.mubr.f32.mxu0 %v154_v50  ;;  %1334 = vmatmul.mubr.f32.vlgmr.msra.gmra.mxu1 %v162_v51  ;;  %v163_v57 = vsub.f32 %v161_v43, %v162_v51 }
  0x98   :  { %1343 = vmatprep.mubr.msk.f32.mxu1 %vm77_vm0, %v1611_v26  ;;  %1342 = vmatpush3.msra.mxu1 %v1578_v6  ;;  %v575_v6 = vsel %vm573_vm4, %v1680_v0, 0 }
  0x99   :  { %1365 = vmatprep.subr.mxu1 %v694_v48  ;;  %v164_v60 = vand.u32 4294901760, %v163_v57  ;;  %v654_v14 = vsub.f32 %v575_v6, %v575_v6 }
  0x9b   :  { %1319 = vmatmul.mubr.f32.vlgmr.msra.gmra.mxu0 %v164_v60  ;;  %1344 = vmatmul.mubr.msk.f32.vlgmr.msra.gmra.mxu1 %vm77_vm0, %v1631_v37  ;;  %v655_v24 = vand.u32 4294901760, %v654_v14 }
  0x9c   :  { %1327 = vmatpush3.msra.mxu0 %v1581_v7  ;;  %1366 = vmatpush3.msra.mxu1 %v694_v48  ;;  %v722_v7 = vand.u32 4294901760, %v721_v4 }
  0x9d   :  { %1328 = vmatprep.mubr.f32.mxu0 %v151_v31  ;;  %1367 = vmatprep.subr.mxu1 %v701_v61  ;;  %v656_v28 = vsub.f32 %v654_v14, %v655_v24 }
  0x9e   :  { %1368 = vmatpush3.msra.mxu1 %v701_v61  ;;  %1336 = vmatprep.subr.mxu0 %v1585_v8 }
  0x9f   :  { %1369 = vmatprep.subr.mxu1 %v708_v2  ;;  %1329 = vmatmul.mubr.f32.vlgmr.msra.gmra.mxu0 %v161_v43  ;;  %v657_v31 = vand.u32 4294901760, %v656_v28 }
  0xa0   :  { %1337 = vmatpush3.msra.mxu0 %v1585_v8  ;;  %1370 = vmatpush3.msra.mxu1 %v708_v2  ;;  %v736_v8 = vand.u32 4294901760, %v735_v12 }
  0xa1   :  { %1338 = vmatprep.mubr.msk.f32.mxu0 %vm77_vm0, %v1611_v26  ;;  %1371 = vmatprep.subr.mxu1 %v715_v9  ;;  %v1720_v26 = vsub.f32 %v578_v21, %v578_v21 }
  0xa2   :  { %1372 = vmatpush3.msra.mxu1 %v715_v9  ;;  %1346 = vmatprep.subr.mxu0 %v1592_v13 }
  0xa3   :  { %1373 = vmatprep.subr.mxu1 %v722_v7  ;;  %1339 = vmatmul.mubr.msk.f32.vlgmr.msra.gmra.mxu0 %vm77_vm0, %v1631_v37  ;;  %v665_v30 = vand.u32 4294901760, %v1720_v26 }
  0xa4   :  { %1347 = vmatpush3.msra.mxu0 %v1592_v13  ;;  %1374 = vmatpush3.msra.mxu1 %v722_v7 }
  0xa5   :  { %1348 = vmatprep.subr.mxu0 %v1599_v18  ;;  %1375 = vmatprep.subr.mxu1 %v729_v16  ;;  %v666_v32 = vsub.f32 %v1720_v26, %v665_v30 }
  0xa6   :  { %1349 = vmatpush3.msra.mxu0 %v1599_v18  ;;  %1376 = vmatpush3.msra.mxu1 %v729_v16 }
  0xa7   :  { %1350 = vmatprep.subr.mxu0 %v1601_v19  ;;  %1377 = vmatprep.subr.mxu1 %v736_v8  ;;  %v667_v34 = vand.u32 4294901760, %v666_v32 }
  0xa8   :  { %1381 = vmatprep.mubr.msk.f32.mxu1 %vm573_vm4, %v1680_v0  ;;  %1351 = vmatpush3.msra.mxu0 %v1601_v19 }
  0xa9   :  { %1378 = vmatpush3.msra.mxu1 %v736_v8  ;;  %1352 = vmatprep.subr.mxu0 %v1613_v27 }
  0xaa   :  { %1379 = vmatprep.subr.mxu1 %v743_v25  ;;  %1353 = vmatpush3.msra.mxu0 %v1613_v27 }
  0xab   :  { %1380 = vmatpush3.msra.mxu1 %v743_v25  ;;  %1354 = vmatprep.subr.mxu0 %v1622_v33 }
  0xac   :  { %1382 = vmatmul.mubr.msk.f32.vlgmr.msra.gmra.mxu1 %vm573_vm4, %v1708_v15  ;;  %1403 = vmatprep.subr.mxu1 %v1592_v13 }
  0xad   :  { %1355 = vmatpush3.msra.mxu0 %v1622_v33  ;;  %1404 = vmatpush3.msra.mxu1 %v1592_v13 }
  0xae   :  { %1419 = vmatprep.mubr.f32.mxu1 %v655_v24  ;;  %1356 = vmatprep.subr.mxu0 %v1636_v40 }
  0xaf   :  { %1405 = vmatprep.subr.mxu1 %v1599_v18  ;;  %1357 = vmatpush3.msra.mxu0 %v1636_v40 }
  0xb0   :  { %1362 = vmatprep.mubr.f32.mxu0 %v657_v31  ;;  %1406 = vmatpush3.msra.mxu1 %v1599_v18  ;;  %v1236_v31 = vld [vmem:[%s1829_s4] ss:$0 sm:$0xff] }
  0xb1   :  { %1358 = vmatprep.subr.mxu0 %v1649_v46  ;;  %1407 = vmatprep.subr.mxu1 %v1601_v19 }
  0xb2   :  { %1359 = vmatpush3.msra.mxu0 %v1649_v46  ;;  %1408 = vmatpush3.msra.mxu1 %v1601_v19 }
  0xb3   :  { %1360 = vmatprep.subr.mxu0 %v1662_v56  ;;  %1409 = vmatprep.subr.mxu1 %v1613_v27 }
  0xb4   :  { %1361 = vmatpush3.msra.mxu0 %v1662_v56  ;;  %1410 = vmatpush3.msra.mxu1 %v1613_v27 }
  0xb5   :  { %1363 = vmatmul.mubr.f32.vlgmr.msra.gmra.mxu0 %v667_v34  ;;  %1384 = vmatprep.subr.mxu0 %v1597_v17  ;;  %v1237_v34 = vld [vmem:[%s1830_s5] ss:$0 sm:$0xff] }
  0xb6   :  { %1411 = vmatprep.subr.mxu1 %v1622_v33  ;;  %1385 = vmatpush3.msra.mxu0 %v1597_v17 }
  0xb7   :  { %1400 = vmatprep.mubr.f32.mxu0 %v654_v14  ;;  %1412 = vmatpush3.msra.mxu1 %v1622_v33 }
  0xb8   :  { %1386 = vmatprep.subr.mxu0 %v1608_v23  ;;  %1413 = vmatprep.subr.mxu1 %v1636_v40 }
  0xb9   :  { %1387 = vmatpush3.msra.mxu0 %v1608_v23  ;;  %1414 = vmatpush3.msra.mxu1 %v1636_v40 }
  0xba   :  { %1388 = vmatprep.subr.mxu0 %v1620_v29  ;;  %1415 = vmatprep.subr.mxu1 %v1649_v46 }
  0xbb   :  { %1389 = vmatpush3.msra.mxu0 %v1620_v29  ;;  %1416 = vmatpush3.msra.mxu1 %v1649_v46 }
  0xbc   :  { %1390 = vmatprep.subr.mxu0 %v1634_v39  ;;  %1417 = vmatprep.subr.mxu1 %v1662_v56 }
  0xbd   :  { %1391 = vmatpush3.msra.mxu0 %v1634_v39  ;;  %1418 = vmatpush3.msra.mxu1 %v1662_v56 }
  0xbe   :  { %1392 = vmatprep.subr.mxu0 %v1647_v45  ;;  %1420 = vmatmul.mubr.f32.vlgmr.msra.gmra.mxu1 %v665_v30 }
  0xbf   :  { %1441 = vmatprep.subr.mxu1 %v1592_v13  ;;  %1393 = vmatpush3.msra.mxu0 %v1647_v45 }
  0xc0   :  { %1442 = vmatpush3.msra.mxu1 %v1592_v13  ;;  %1457 = vmatprep.mubr.msk.f32.mxu1 %vm573_vm4, %v1680_v0 }
  0xc1   :  { %1394 = vmatprep.subr.mxu0 %v1658_v54  ;;  %1443 = vmatprep.subr.mxu1 %v1599_v18 }
  0xc2   :  { %1395 = vmatpush3.msra.mxu0 %v1658_v54  ;;  %1444 = vmatpush3.msra.mxu1 %v1599_v18 }
  0xc3   :  { %1396 = vmatprep.subr.mxu0 %v1669_v59  ;;  %1445 = vmatprep.subr.mxu1 %v1601_v19 }
  0xc4   :  { %1397 = vmatpush3.msra.mxu0 %v1669_v59  ;;  %1446 = vmatpush3.msra.mxu1 %v1601_v19 }
  0xc5   :  { %1398 = vmatprep.subr.mxu0 %v1683_v1  ;;  %1447 = vmatprep.subr.mxu1 %v1613_v27 }
  0xc6   :  { %1399 = vmatpush3.msra.mxu0 %v1683_v1  ;;  %1448 = vmatpush3.msra.mxu1 %v1613_v27 }
  0xc7   :  { %1401 = vmatmul.mubr.f32.vlgmr.msra.gmra.mxu0 %v1720_v26  ;;  %1422 = vmatprep.subr.mxu0 %v1605_v22 }
  0xc8   :  { %1449 = vmatprep.subr.mxu1 %v1622_v33  ;;  %1423 = vmatpush3.msra.mxu0 %v1605_v22 }
  0xc9   :  { %1438 = vmatprep.mubr.msk.f32.mxu0 %vm573_vm4, %v1680_v0  ;;  %1450 = vmatpush3.msra.mxu1 %v1622_v33 }
  0xca   :  { %1424 = vmatprep.subr.mxu0 %v1628_v35  ;;  %1451 = vmatprep.subr.mxu1 %v1636_v40 }
  0xcb   :  { %1425 = vmatpush3.msra.mxu0 %v1628_v35  ;;  %1452 = vmatpush3.msra.mxu1 %v1636_v40 }
  0xcc   :  { %1426 = vmatprep.subr.mxu0 %v1643_v42  ;;  %1453 = vmatprep.subr.mxu1 %v1649_v46 }
  0xcd   :  { %1427 = vmatpush3.msra.mxu0 %v1643_v42  ;;  %1454 = vmatpush3.msra.mxu1 %v1649_v46 }
  0xce   :  { %1428 = vmatprep.subr.mxu0 %v1655_v53  ;;  %1455 = vmatprep.subr.mxu1 %v1662_v56 }
  0xcf   :  { %1429 = vmatpush3.msra.mxu0 %v1655_v53  ;;  %1456 = vmatpush3.msra.mxu1 %v1662_v56 }
  0xd0   :  { %1430 = vmatprep.subr.mxu0 %v1666_v58  ;;  %1458 = vmatmul.mubr.msk.f32.vlgmr.msra.gmra.mxu1 %vm573_vm4, %v1708_v15 }
  0xd1   :  { %1431 = vmatpush3.msra.mxu0 %v1666_v58 }
  0xd2   :  { %1432 = vmatprep.subr.mxu0 %v1677_v63 }
  0xd3   :  { %1433 = vmatpush3.msra.mxu0 %v1677_v63 }
  0xd4   :  { %1434 = vmatprep.subr.mxu0 %v1690_v5 }
  0xd5   :  { %1435 = vmatpush3.msra.mxu0 %v1690_v5 }
  0xd6   :  { %1436 = vmatprep.subr.mxu0 %v1700_v11 }
  0xd7   :  { %1437 = vmatpush3.msra.mxu0 %v1700_v11 }
  0xd8   :  { %1439 = vmatmul.mubr.msk.f32.vlgmr.msra.gmra.mxu0 %vm573_vm4, %v1708_v15 }
 0x152   :  { %v1325_v17 = vpop.f32.mrf.mxu1 }
 0x154   :  { %v242_v19 = vpop.f32.mrf.mxu1 }
 0x157   :  { %v1335_v27 = vpop.f32.mrf.mxu1 }
 0x159   :  { %v403_v37 = vpop.f32.mrf.mxu1 }
 0x15b   :  { %v1320_v13 = vpop.f32.mrf.mxu0  ;;  %v1345_v41 = vpop.f32.mrf.mxu1 }
 0x15c   :  { %v249_v23 = vadd.f32 %v1325_v17, %v1320_v13 }
 0x15d   :  { %v156_v18 = vpop.f32.mrf.mxu0  ;;  %v563_v46 = vpop.f32.mrf.mxu1 }
 0x15e   :  { %v243_v33 = vadd.f32 %v242_v19, %v156_v18 }
 0x15f   :  { %v1330_v22 = vpop.f32.mrf.mxu0 }
 0x160   :  { %v330_v35 = vadd.f32 %v1330_v22, %v249_v23 }
 0x161   :  { %v322_v29 = vpop.f32.mrf.mxu0 }
 0x162   :  { %v323_v36 = vadd.f32 %v322_v29, %v243_v33  ;;  %v412_v39 = vadd.f32 %v1335_v27, %v330_v35 }
 0x163   :  { %v1340_v38 = vpop.f32.mrf.mxu0 }
 0x164   :  { %v404_v40 = vadd.f32 %v403_v37, %v323_v36  ;;  %v492_v43 = vadd.f32 %v1340_v38, %v412_v39 }
 0x165   :  { %v485_v42 = vpop.f32.mrf.mxu0 }
 0x166   :  { %v486_v45 = vadd.f32 %v485_v42, %v404_v40  ;;  %v570_v47 = vadd.f32 %v1345_v41, %v492_v43 }
 0x168   :  { %v564_v51 = vadd.f32 %v563_v46, %v486_v45 }
 0x16c   :  { %v1383_v48 = vpop.f32.mrf.mxu1 }
 0x16e   :  { %v780_v54 = vpop.f32.mrf.mxu1 }
 0x175   :  { %v1364_v44 = vpop.f32.mrf.mxu0 }
 0x176   :  { %v670_v50 = vadd.f32 %v1364_v44, %v570_v47 }
 0x177   :  { %v659_v49 = vpop.f32.mrf.mxu0 }
 0x178   :  { %v660_v53 = vadd.f32 %v659_v49, %v564_v51  ;;  %v787_v55 = vadd.f32 %v1383_v48, %v670_v50 }
 0x17a   :  { %v781_v59 = vadd.f32 %v780_v54, %v660_v53 }
 0x17e   :  { %v1421_v56 = vpop.f32.mrf.mxu1 }
 0x180   :  { %v962_v61 = vpop.f32.mrf.mxu1 }
 0x187   :  { %v1402_v52 = vpop.f32.mrf.mxu0 }
 0x188   :  { %v882_v58 = vadd.f32 %v1402_v52, %v787_v55 }
 0x189   :  { %v874_v57 = vpop.f32.mrf.mxu0 }
 0x18a   :  { %v875_v60 = vadd.f32 %v874_v57, %v781_v59  ;;  %v971_v62 = vadd.f32 %v1421_v56, %v882_v58 }
 0x18c   :  { %v963_v2 = vadd.f32 %v962_v61, %v875_v60 }
 0x190   :  { %v1459_v63 = vpop.f32.mrf.mxu1 }
 0x192   :  { %v1150_v6 = vpop.f32.mrf.mxu1 }
 0x198   :  { %v1440_v0 = vpop.f32.mrf.mxu0 }
 0x199   :  { %v1072_v1 = vadd.f32 %v1440_v0, %v971_v62 }
 0x19a   :  { %v1065_v3 = vpop.f32.mrf.mxu0 }
 0x19b   :  { %v1066_v4 = vadd.f32 %v1065_v3, %v963_v2  ;;  %v1157_v5 = vadd.f32 %v1459_v63, %v1072_v1 }
 0x19d   :  { %1164 = vadd.xlane.f32.xlu1 %v1157_v5  ;;  %v1151_v9 = vadd.f32 %v1150_v6, %v1066_v4 }
 0x19f   :  { %1162 = vadd.xlane.f32.xlu0 %v1151_v9 }
 0x226   :  { %v1165_v10 = vpop.xlane.xlu1 %1164 }
 0x227   :  { %v1168_v7 = vmul.f32 0.0078125, %v1165_v10 }
 0x228   :  { %v1163_v11 = vpop.xlane.xlu0 %1162 }
 0x229   :  { %v1167_v12 = vmul.f32 0.0078125, %v1163_v11  ;;  %v1170_v15 = vsub.f32 %v1157_v5, %v1168_v7 }
 0x22b   :  { %v1169_v14 = vsub.f32 %v1151_v9, %v1167_v12  ;;  %v1172_v20 = vmul.f32 %v1170_v15, %v1170_v15 }
 0x22d   :  { %v1171_v16 = vmul.f32 %v1169_v14, %v1169_v14 }
 0x22f   :  { %1173 = vadd.xlane.f32.xlu0 %v1171_v16 }
 0x233   :  { %1175 = vadd.xlane.f32.xlu0 %v1172_v20 }
 0x2b8   :  { %v1174_v8 = vpop.xlane.xlu0 %1173 }
 0x2b9   :  { %v1177_v21 = vmul.f32 0.0078125, %v1174_v8 }
 0x2bb   :  { %v1179_v24 = vadd.f32 1e-12, %v1177_v21 }
 0x2bc   :  { %v1176_v25 = vpop.xlane.xlu0 %1175 }
 0x2bd   :  { %1468 = vrsqrt.f32 %v1179_v24  ;;  %v1178_v26 = vmul.f32 0.0078125, %v1176_v25 }
 0x2bf   :  { %v1180_v28 = vadd.f32 1e-12, %v1178_v26 }
 0x2c1   :  { %1470 = vrsqrt.f32 %v1180_v28 }
 0x2ca   :  { %v1469_v30 = vpop.eup %1468 }
 0x2cb   :  { %v1183_v32 = vmul.f32 %v1469_v30, %v1169_v14 }
 0x2cd   :  { %v1191_v13 = vmul.f32 %v1236_v31, %v1183_v32 }
 0x2ce   :  { %v1471_v17 = vpop.eup %1470 }
 0x2cf   :  { %v1184_v18 = vmul.f32 %v1471_v17, %v1170_v15  ;;  %v1199_v19 = vadd.f32 %v1237_v34, %v1191_v13 }
 0x2d1   :  { %v1192_v22 = vmul.f32 %v1236_v31, %v1184_v18  ;;  %1201 = vst [vmem:[#allocation5] sm:$0xff] %v1199_v19 }
 0x2d3   :  { %v1200_v23 = vadd.f32 %v1237_v34, %v1192_v22 }
 0x2d5   :  { %1202 = vst [vmem:[#allocation5 + $0x8] sm:$0xff] %v1200_v23 }
 0x2d6   :  { %1503 = shalt.err (!%p1500_p9)
}
 0x2d7   :  { %1214 = dma.vmem_to_hbm [thread:$0]  %s1209_s15, 256, %s1831_s6, [#allocation4], %s1517_s24, %s1517_s24, %s1518_s25  }
 0x2d8   :  { %1514 = dma.done.wait [#allocation4], 256  }
 0x2d9   :  { %1515 = vsyncadd [#allocation4], 4294967040 }
 0x2da   :  { %1218 = vsyncpa [#allocation3], 1 }
 0x2db   :  { %1219 = vsyncpa [#allocation4], 1 }

</bundles_post_ra>
